<compile_context>
chip_gen: v7x
topology: tpu7x:2x2x1
jax: 0.10.0
libtpu: 0.0.40
codegen_flags: <defaults>
</compile_context>

<pallas_src>
import jax
import jax.numpy as jnp
from jax import lax
from jax.experimental import pallas as pl
from jax.experimental.pallas import tpu as pltpu


# ----------------------------- Pallas kernel ------------------------------- #

def _grouped_expert_kernel(tile_expert_ref,  # SMEM (num_tiles,) int32 (scalar prefetch)
                           xg_ref,           # VMEM (tm, tk)  grouped, pre-scaled tokens
                           w_ref,            # VMEM (tk, tn)  this tile's expert weights
                           o_ref,            # VMEM (tm, tn)  output tile
                           acc_ref):         # VMEM (tm, tn)  f32 accumulator
    del tile_expert_ref  # consumed by the index_maps, not the body
    c = pl.program_id(2)

    @pl.when(c == 0)
    def _init():
        acc_ref[...] = jnp.zeros_like(acc_ref)

    # Plain A@B contraction: weights were pre-transposed once to (D_in, D_out),
    # so no per-tile XLU transpose of the RHS block is needed.
    acc_ref[...] += jnp.dot(xg_ref[...], w_ref[...],
                            preferred_element_type=jnp.float32)

    @pl.when(c == pl.num_programs(2) - 1)
    def _store():
        o_ref[...] = acc_ref[...].astype(o_ref.dtype)


# ------------------------------ JAX wrapper -------------------------------- #

def _round_up(x, m):
    return (x + m - 1) // m * m


def _pick_tile(dim, target):
    """Largest 'nice' tile <= target that divides dim, else the full dim."""
    for cand in (target, 1024, 512, 256, 128):
        if cand <= dim and dim % cand == 0:
            return cand
    return dim


def moe_forward(x, wg, w_experts, n_expert_per_token=2, *,
                tm=None, tn=None, tk=None, compute_dtype=None):
    """MoE forward with grouped (megablocks-style) expert matmuls.

    x:         (T, D)      input tokens
    wg:        (E, D)      gate Linear weight
    w_experts: (E, D, D)   stacked expert Linear weights (applied as x @ W.T)
    """
    T, D = x.shape
    E, D_out, D_in = w_experts.shape
    assert D_in == D and wg.shape == (E, D)
    k_top = n_expert_per_token
    cdt = x.dtype if compute_dtype is None else jnp.dtype(compute_dtype)

    # ---- gating (tiny; stays in XLA glue). No f32 upcast of x in HBM. ----
    logits = jnp.dot(x, wg.T, preferred_element_type=jnp.float32)        # (T, E)
    top_w, selected = lax.top_k(logits, k_top)                            # (T, k)
    top_w = jax.nn.softmax(top_w, axis=-1).astype(cdt)                    # f32 softmax -> cdt

    # ---- tile sizes ----
    A = T * k_top                                     # total assignments
    if tm is None:
        tm = min(512, _round_up(A, 8))                # big token tiles: weight stream is the roofline
    if tn is None:
        tn = _pick_tile(D_out, 1024)
    if tk is None:
        tk = _pick_tile(D_in, 1024)
    assert tm % 8 == 0 and D_out % tn == 0 and D_in % tk == 0
    nn, nk = D_out // tn, D_in // tk

    # ---- group assignments by expert, pad each group to a multiple of tm ----
    # Static worst-case tile count: sum_e ceil(c_e/tm) <= floor(A/tm) + E.
    num_tiles = A // tm + E
    P = num_tiles * tm

    flat_expert = selected.reshape(A)                                     # (A,)
    flat_token = jnp.arange(A, dtype=jnp.int32) // k_top                  # (A,)
    flat_weight = top_w.reshape(A)                                        # (A,)

    order = jnp.argsort(flat_expert)                                      # stable
    counts = jnp.bincount(flat_expert, length=E)                          # (E,)
    padded = _round_up(counts, tm)                                        # (E,)
    ends_pad = jnp.cumsum(padded)
    starts_pad = ends_pad - padded
    starts_sorted = jnp.cumsum(counts) - counts

    p = jnp.arange(P, dtype=jnp.int32)
    e_of_p = jnp.searchsorted(ends_pad, p, side='right')                  # in [0, E]
    e_cl = jnp.minimum(e_of_p, E - 1).astype(jnp.int32)
    q = p - starts_pad[e_cl]
    valid = (e_of_p < E) & (q < counts[e_cl])
    src = jnp.where(valid, starts_sorted[e_cl] + q, 0)
    assign = order[src]                                                   # (P,)
    tok = jnp.where(valid, flat_token[assign], 0)
    wgt = jnp.where(valid, flat_weight[assign], 0).astype(cdt)
    dst = jnp.where(valid, flat_token[assign], T)                         # dummy row T for padding

    # Gather + pre-scale by the routing weight (folded into the copy we must
    # do anyway to build the grouped buffer).
    xg = x.astype(cdt)[tok] * wgt[:, None]                                # (P, D_in)
    tile_expert = e_cl[::tm]                                              # (num_tiles,) int32

    # One-time weight layout fix: (E, D_out, D_in) -> (E, D_in, D_out).
    w_t = jnp.swapaxes(w_experts, 1, 2).astype(cdt)

    grid_spec = pltpu.PrefetchScalarGridSpec(
        num_scalar_prefetch=1,
        grid=(num_tiles, nn, nk),
        in_specs=[
            pl.BlockSpec((tm, tk), lambda g, n, c, te: (g, c)),            # grouped tokens
            pl.BlockSpec((None, tk, tn), lambda g, n, c, te: (te[g], c, n)),  # this tile's expert
        ],
        out_specs=pl.BlockSpec((tm, tn), lambda g, n, c, te: (g, n)),
        scratch_shapes=[pltpu.VMEM((tm, tn), jnp.float32)],
    )

    y = pl.pallas_call(
        _grouped_expert_kernel,
        grid_spec=grid_spec,
        out_shape=jax.ShapeDtypeStruct((P, D_out), cdt),
        compiler_params=pltpu.CompilerParams(
            dimension_semantics=("parallel", "parallel", "arbitrary"),
            vmem_limit_bytes=48 * 1024 * 1024),
    )(tile_expert, xg, w_t)

    # Scatter-add per-assignment results back to tokens (f32), drop dummy row.
    out = jnp.zeros((T + 1, D_out), jnp.float32).at[dst].add(y.astype(jnp.float32))
    return out[:T].astype(x.dtype)


# ------------------------------ reference ---------------------------------- #

def moe_reference(x, wg, w_experts, k=2):
    # Gating uses the exact same ops as the wrapper so top-k selection is
    # bit-identical; expert math is done independently in f32.
    logits = jnp.dot(x, wg.T, preferred_element_type=jnp.float32)
    weights, selected = lax.top_k(logits, k)
    weights = jax.nn.softmax(weights, axis=-1)                            # f32
    E = w_experts.shape[0]
    xf = x.astype(jnp.float32)
    out = jnp.zeros(x.shape, jnp.float32)
    for e in range(E):
        mask = (selected == e)                                            # (T, k)
        w_e = jnp.sum(jnp.where(mask, weights, 0.0), axis=1)              # (T,)
        out = out + w_e[:, None] * (xf @ w_experts[e].astype(jnp.float32).T)
    return out.astype(x.dtype)


# --------------------------------- main ------------------------------------ #

if __name__ == "__main__":
    E, K = 8, 2
    keys = jax.random.split(jax.random.PRNGKey(0), 6)

    # Case 1: small, single-tile path (blocks == full array dims).
    T, D = 8, 32
    x = jax.random.normal(keys[0], (T, D), dtype=jnp.float32)
    wg = jax.random.normal(keys[1], (E, D), dtype=jnp.float32) * (1.0 / D ** 0.5)
    we = jax.random.normal(keys[2], (E, D, D), dtype=jnp.float32) * (1.0 / D ** 0.5)
    out = jax.block_until_ready(moe_forward(x, wg, we, n_expert_per_token=K))
    ref = moe_reference(x, wg, we, k=K)
    assert out.shape == (T, D) and out.dtype == x.dtype
    assert jnp.allclose(out, ref, atol=1e-4, rtol=1e-4), "mismatch vs reference (case 1)"

    # Case 2: multi-tile path — token/out/contraction tiling, grouped tiles
    # spanning several experts, f32 accumulation across contraction steps.
    T2, D2 = 64, 256
    x2 = jax.random.normal(keys[3], (T2, D2), dtype=jnp.float32)
    wg2 = jax.random.normal(keys[4], (E, D2), dtype=jnp.float32) * (1.0 / D2 ** 0.5)
    we2 = jax.random.normal(keys[5], (E, D2, D2), dtype=jnp.float32) * (1.0 / D2 ** 0.5)
    out2 = jax.block_until_ready(
        moe_forward(x2, wg2, we2, n_expert_per_token=K, tm=16, tn=128, tk=128))
    ref2 = moe_reference(x2, wg2, we2, k=K)
    assert jnp.allclose(out2, ref2, atol=2e-3, rtol=2e-3), "mismatch vs reference (case 2)"

    # Case 3: bf16 activations/weights (recommended production dtype), default
    # tiles; f32 MXU accumulation keeps the error small (loose tolerance).
    x3, wg3, we3 = x2.astype(jnp.bfloat16), wg2.astype(jnp.bfloat16), we2.astype(jnp.bfloat16)
    out3 = jax.block_until_ready(moe_forward(x3, wg3, we3, n_expert_per_token=K))
    ref3 = moe_reference(x3, wg3, we3, k=K)
    assert out3.dtype == jnp.bfloat16
    assert jnp.allclose(out3.astype(jnp.float32), ref3.astype(jnp.float32),
                        atol=1e-1, rtol=1e-1), "mismatch vs reference (case 3, bf16)"

    print("KERNEL_OK")
</pallas_src>

<mosaic_0001>
module attributes {stable_mosaic.version = 11 : i64} {
  func.func @_grouped_expert_kernel(%arg0: i32, %arg1: i32, %arg2: i32, %arg3: memref<9xi32, #tpu.memory_space<smem>>, %arg4: memref<16x32xf32, #tpu.memory_space<vmem>>, %arg5: memref<1x32x32xf32, #tpu.memory_space<vmem>>, %arg6: memref<16x32xf32, #tpu.memory_space<vmem>>, %arg7: memref<16x32xf32, #tpu.memory_space<vmem>>) attributes {dimension_semantics = [#tpu.dimension_semantics<parallel>, #tpu.dimension_semantics<parallel>, #tpu.dimension_semantics<arbitrary>], iteration_bounds = array<i64: 9, 1, 1>, scalar_prefetch = 1 : i64, scratch_operands = 1 : i64, tpu.core_type = #tpu.core_type<tc>, window_params = [{transform_indices = @transform_0, window_bounds = array<i64: 16, 32>}, {transform_indices = @transform_1, window_bounds = array<i64: 1, 32, 32>}, {transform_indices = @transform_2, window_bounds = array<i64: 16, 32>}]} {
    %c0_i32 = arith.constant 0 : i32
    %0 = arith.cmpi eq, %arg2, %c0_i32 : i32
    %1 = arith.extui %0 : i1 to i32
    %c0_i32_0 = arith.constant 0 : i32
    %2 = arith.cmpi ne, %1, %c0_i32_0 : i32
    scf.if %2 {
      %cst_11 = arith.constant 0.000000e+00 : f32
      %13 = vector.broadcast %cst_11 : f32 to vector<16x32xf32>
      %c0_12 = arith.constant 0 : index
      %c0_13 = arith.constant 0 : index
      %14 = vector.load %arg7[%c0_12, %c0_13] : memref<16x32xf32, #tpu.memory_space<vmem>>, vector<16x32xf32>
      tpu.vector_store %arg7[%c0_12, %c0_13], %13 {strides = array<i32>} : memref<16x32xf32, #tpu.memory_space<vmem>>, vector<16x32xf32>,
    } else {
    }
    %c0 = arith.constant 0 : index
    %c0_1 = arith.constant 0 : index
    %3 = vector.load %arg7[%c0, %c0_1] : memref<16x32xf32, #tpu.memory_space<vmem>>, vector<16x32xf32>
    %c0_2 = arith.constant 0 : index
    %c0_3 = arith.constant 0 : index
    %4 = vector.load %arg4[%c0_2, %c0_3] : memref<16x32xf32, #tpu.memory_space<vmem>>, vector<16x32xf32>
    %c0_4 = arith.constant 0 : index
    %c0_5 = arith.constant 0 : index
    %c0_6 = arith.constant 0 : index
    %5 = vector.load %arg5[%c0_4, %c0_5, %c0_6] : memref<1x32x32xf32, #tpu.memory_space<vmem>>, vector<1x32x32xf32>
    %6 = vector.shape_cast %5 : vector<1x32x32xf32> to vector<32x32xf32>
    %cst = arith.constant dense<0.000000e+00> : vector<16x32xf32>
    %7 = tpu.matmul %4, %6, %cst {dimension_numbers = #tpu.dot_dimension_numbers<[1], [0], [0], [1], [0, 0, 1, 1], [], []>} : vector<16x32xf32>, vector<32x32xf32>, vector<16x32xf32> -> vector<16x32xf32>
    %8 = arith.addf %3, %7 : vector<16x32xf32>
    %c0_7 = arith.constant 0 : index
    %c0_8 = arith.constant 0 : index
    %9 = vector.load %arg7[%c0_7, %c0_8] : memref<16x32xf32, #tpu.memory_space<vmem>>, vector<16x32xf32>
    tpu.vector_store %arg7[%c0_7, %c0_8], %8 {strides = array<i32>} : memref<16x32xf32, #tpu.memory_space<vmem>>, vector<16x32xf32>,
    %c0_i32_9 = arith.constant 0 : i32
    %10 = arith.cmpi eq, %arg2, %c0_i32_9 : i32
    %11 = arith.extui %10 : i1 to i32
    %c0_i32_10 = arith.constant 0 : i32
    %12 = arith.cmpi ne, %11, %c0_i32_10 : i32
    scf.if %12 {
      %c0_11 = arith.constant 0 : index
      %c0_12 = arith.constant 0 : index
      %13 = vector.load %arg7[%c0_11, %c0_12] : memref<16x32xf32, #tpu.memory_space<vmem>>, vector<16x32xf32>
      %c0_13 = arith.constant 0 : index
      %c0_14 = arith.constant 0 : index
      %14 = vector.load %arg6[%c0_13, %c0_14] : memref<16x32xf32, #tpu.memory_space<vmem>>, vector<16x32xf32>
      tpu.vector_store %arg6[%c0_13, %c0_14], %13 {strides = array<i32>} : memref<16x32xf32, #tpu.memory_space<vmem>>, vector<16x32xf32>,
    } else {
    }
    return
  }
  func.func @transform_0(%arg0: i32, %arg1: i32, %arg2: i32, %arg3: memref<9xi32, #tpu.memory_space<smem>>) -> (i32, i32) {
    %c0_i32 = arith.constant 0 : i32
    return %arg0, %arg2 : i32, i32
  }
  func.func @transform_1(%arg0: i32, %arg1: i32, %arg2: i32, %arg3: memref<9xi32, #tpu.memory_space<smem>>) -> (i32, i32, i32) {
    %0 = arith.index_cast %arg0 : i32 to index
    %1 = memref.load %arg3[%0] : memref<9xi32, #tpu.memory_space<smem>>
    %c0_i32 = arith.constant 0 : i32
    return %1, %arg2, %arg1 : i32, i32, i32
  }
  func.func @transform_2(%arg0: i32, %arg1: i32, %arg2: i32, %arg3: memref<9xi32, #tpu.memory_space<smem>>) -> (i32, i32) {
    %c0_i32 = arith.constant 0 : i32
    return %arg0, %arg1 : i32, i32
  }
}

</mosaic_0001>

<bundles_post_ra>
// kernel: tpu_custom_call.1
= control target key start
LH: loop header
LB: loop body
LE: loop exit
PB: predicated region body
PF: predicated region fallthrough
CT: control target
= control target key end

     0   :  { %s824_s0 = inlined_call_operand.vmem [shape: s32[9], index: 0, kind: input, shape index: {}]   ;;  %s825_s1 = inlined_call_operand.vmem [shape: f32[144,32], index: 1, kind: input, shape index: {}]   ;;  %s826_s2 = inlined_call_operand.hbm [shape: f32[8,32,32], index: 2, kind: input, shape index: {}]   ;;  %s827_s3 = inlined_call_operand.vmem [shape: f32[144,32], index: 3, kind: output, shape index: {}]  }
   0x1   :  { %s8_s14 = sshll.u32 %s824_s0, 4  ;;  %s9_s14 = int_to_ptr.vmem [resolvable:$true] %s8_s14 }
   0x2   :  { %s566_s15 = scalar_lea.vmem %s9_s14, 16  ;;  %p571_p1 = scmp.lt.s32.totalorder %s9_s14, %s9_s14 }
   0x3   :  { %p567_p0 = scmp.ne.s32.totalorder %s9_s14, %s566_s15  ;;  %p572_p2 = scmp.lt.s32.totalorder %s566_s15, %s566_s15 }
   0x5   :  { %p573_p3 = por %p572_p2, %p571_p1 }
   0x7   :  { %p574_p4 = pnand %p573_p3, %p567_p0 }
   0x9   :  { %577 = shalt.err (!%p574_p4)  }
   0xa   :  { %s662_s16 = smov [#allocation4]  }
   0xb   :  { %11 = dma.vmem_to_smem %s9_s14, 16, %s662_s16, [#allocation3] }
   0xc   :  { %632 = dma.done.wait [#allocation3], 16 }
   0xd   :  { %633 = vsyncadd [#allocation3], 4294967280 }
   0xe   :  { %13 = sfence }
   0xf   :  { %14 = vsyncpa [#allocation6], 0 }
  0x10   :  { %16 = vsyncpa [#allocation6 + $0x1], 0  ;;  %s690_s17 = smov 0   ;;  %s692_s18 = smov 0  }
  0x11   :  { %s694_s0 = smov 0   ;;  %s696_s19 = smov 0  }
  0x12   :  { %s698_s20 = smov 0   ;;  %s700_s21 = smov 0  }
  0x13 LB: > { %s41_s22 = sadd.s32 1, %s656_s20  ;;  %s460_s23 = sadd.s32 4294967295, %s660_s21   ;;  %s660_s21 = sphi %s700_s21, %s22_s21   ;;  %s656_s20 = sphi %s698_s20, %s837_s20   ;;  %s652_s19 = sphi %s696_s19, %s836_s19   ;;  %s648_s0 = sphi %s694_s0, %s835_s0   ;;  %s644_s18 = sphi %s692_s18, %s834_s18   ;;  %s640_s17 = sphi %s690_s17, %s833_s17  }
  0x14   : > { %p43_p5 = scmp.ge.s32.totalorder %s41_s22, 9  ;;  %s73_s24 = sld [smem:[#allocation4 + %s656_s20]] }
  0x15   : > { %p89_p6 = scmp.ne.s32.totalorder %s648_s0, %s644_s18  ;;  %p90_p7 = scmp.eq.s32.totalorder %s660_s21, 0 }
  0x16   : > { %s839_s22 = smov (%p43_p5, %s41_s22), 0  ;;  %p95_p8 = scmp.ne.s32.totalorder %s644_s18, %s640_s17 }
  0x17   : > { %s74_s25 = sld [smem:[#allocation4 + %s839_s22]]  ;;  %p96_p9 = scmp.eq.s32.totalorder %s460_s23, 0 }
  0x18   : > { %s159_s27 = sand.u32 1, %s648_s0   ;;  %p91_p11 = por %p90_p7, %p89_p6 }
  0x19   : > { %p728_p10 = por %p96_p9, %p95_p8  ;;  %s82_s28 = sadd.s32 1, %s648_s0 }
  0x1a   : > { %p513_p12 = scmp.lt.s32.totalorder %s660_s21, 9  ;;  %s464_s30 = sshll.u32 %s159_s27, 5 }
  0x1b   : > { %s829_s26 = scalar_select %p728_p10, 1, 0 }
  0x1c   : > { %p735_p0 = pnand %p513_p12, %p91_p11  ;;  %p467_p1 = scmp.ge.s32.totalorder %s660_s21, 1 }
  0x1d   : > { %s75_s29 = ssub.s32 %s73_s24, %s74_s25  ;;  %p182_p2 = scmp.lt.s32.totalorder %s660_s21, 10 }
  0x1e   : > { %p80_p13 = scmp.eq.s32.totalorder %s75_s29, 0  ;;  %s163_s9 = scalar_lea.vmem [#allocation5], %s464_s30 }
  0x1f   : > { %s503_s5 = scalar_select %p91_p11, [#allocation4], [#allocation7] }
  0x20   : > { %s740_s6 = scalar_select %p80_p13, %s648_s0, %s82_s28  }
  0x21   : > { %s504_s7 = scalar_select %p91_p11, %s656_s20, 0 }
  0x22   : > { %s841_s5 = smov (!%p513_p12, %s503_s5), [#allocation8]  ;;  %s174_s10 = sshll.u32 %s163_s9, 4  ;;  %s749_s10 = int_to_ptr.vmem [resolvable:$true] %s174_s10 }
  0x23   : > { %s843_s7 = smov (!%p513_p12, %s504_s7), 0  ;;  %p745_p3 = pnand %p467_p1, %p182_p2 }
  0x24   : > { %s164_s8 = sld [smem:[%s841_s5 + %s843_s7]]  ;;  %s756_s16 = scalar_lea.sflag [#allocation6], %s159_s27 }
  0x25   : > { %p580_p5 = pneg %p735_p0  ;;  %s583_s25 = scalar_lea.hbm %s826_s2, 4096 }
  0x2a   : > { %s477_s12 = sshll.u32 %s164_s8, 9 }
  0x2b   : > { %s754_s15 = scalar_lea.hbm %s826_s2, %s477_s12 }
  0x2c   : > { %s578_s17 = scalar_lea.hbm %s754_s15, 512  ;;  %p584_p8 = scmp.lt.u32.totalorder %s754_s15, %s826_s2 }
  0x2d   : > { %p579_p4 = scmp.ne.s32.totalorder %s754_s15, %s578_s17  ;;  %p585_p9 = scmp.lt.u32.totalorder %s583_s25, %s578_s17 }
  0x2e   : > { %p587_p12 = scmp.lt.u32.totalorder %s578_s17, %s754_s15 }
  0x2f   : > { %p581_p6 = pnand %p580_p5, %p579_p4  ;;  %p586_p11 = por %p585_p9, %p584_p8 }
  0x31   : > { %p582_p7 = pneg %p581_p6  ;;  %p588_p13 = por %p587_p12, %p586_p11 }
  0x33   : > { %p589_p1 = pnand %p588_p13, %p582_p7 }
  0x35   : > { %592 = shalt.err (!%p589_p1)
}
  0x36   : > { %s593_s27 = scalar_lea.vmem %s749_s10, 512  ;;  %s663_s30 = smov [#allocation5]  }
  0x37   : > { %p594_p2 = scmp.ne.s32.totalorder %s749_s10, %s593_s27  ;;  %s598_s5 = sshll.u32 %s663_s30, 4  ;;  %s599_s5 = int_to_ptr.vmem [resolvable:$false] %s598_s5 }
  0x38   : > { %s600_s7 = scalar_lea.vmem %s599_s5, 1024  ;;  %p601_p10 = scmp.lt.s32.totalorder %s749_s10, %s599_s5 }
  0x39   : > { %p596_p4 = pnand %p594_p2, %p580_p5  ;;  %p602_p8 = scmp.lt.s32.totalorder %s600_s7, %s593_s27 }
  0x3b   : > { %p597_p6 = pneg %p596_p4  ;;  %p603_p9 = por %p602_p8, %p601_p10 }
  0x3d   : > { %p604_p11 = pnand %p603_p9, %p597_p6 }
  0x3f   : > { %607 = shalt.err (!%p604_p11)
}
  0x40   : > { %s664_s8 = smov 128   ;;  %s665_s9 = smov 8  }
  0x41   : > { %512 = dma.hbm_to_vmem [thread:$0]  (!%p735_p0), %s754_s15, 512, %s749_s10, %s756_s16, %s664_s8, %s664_s8, %s665_s9  }
  0x42   : > { %186 = sbr.rel (%p745_p3) target bundleno = 309 (0x135), region = 28  ;;  %s188_s12 = sand.u32 (!%p745_p3), 1, %s644_s18  }
  0x43   : > { %s468_s13 = sshll.u32 (!%p745_p3), %s188_s12, 5  ;;  %s189_s14 = scalar_lea.sflag (!%p745_p3), [#allocation6], %s188_s12 }
  0x44   : > { %s192_s17 = scalar_lea.vmem (!%p745_p3), [#allocation5], %s468_s13  ;;  %p832_p10 = scmp.ne.s32.totalorder (!%p745_p3), %s829_s26, 0 }
  0x49   : > { %635 = dma.done.wait (%p832_p10), %s189_s14, 512  }
  0x4a   : > { %637 = vsyncadd (%p832_p10), %s189_s14, 4294966784  ;;  %s469_s23 = sshll.u32 %s652_s19, 1  ;;  %vm248_vm0 = vcmask 261120   ;;  %v666_v0 = vmov 0.0   ;;  %v255_v1 = vld [vmem:[%s192_s17] sm:$0xff]  ;;  %v256_v2 = vld [vmem:[%s192_s17 + $0x8] sm:$0xff] }
  0x4b   : > { %p225_p5 = scmp.lt.s32.totalorder %s469_s23, 17  ;;  %250 = vst.msk [vmem:[#allocation2 + $0x8] sm:$0xff] %vm248_vm0, %v666_v0  ;;  %249 = vst.msk [vmem:[#allocation2] sm:$0xff] %vm248_vm0, %v666_v0  ;;  %v257_v3 = vld [vmem:[%s192_s17 + $0x10] sm:$0xff]  ;;  %v495_v4 = vpack.c.bf16 %v256_v2, %v255_v1  ;;  %v258_v5 = vld [vmem:[%s192_s17 + $0x18] sm:$0xff] }
  0x4c   : > { %v499_v7 = vpack.c.bf16 %v258_v5, %v257_v3 }
  0x4d   : > { %s845_s23 = smov (!%p225_p5, %s469_s23), 17  ;;  %496 = vmatprep.subr.bf16.mxu0 %v495_v4 }
  0x4e   : > { %s470_s4 = sshll.u32 %s845_s23, 3  ;;  %498 = vmatpush3.bf16.msra.mxu0 %v495_v4 }
  0x4f   : > { %s231_s15 = scalar_lea.vmem %s825_s1, %s470_s4  ;;  %500 = vmatprep.subr.bf16.mxu0 %v499_v7  ;;  %s242_s16 = scalar_lea.vmem %s827_s3, %s470_s4 }
  0x50   : > { %v253_v6 = vld [vmem:[%s231_s15] sm:$0xff]  ;;  %v254_v8 = vld [vmem:[%s231_s15 + $0x8] sm:$0xff] }
  0x51   : > { %492 = vmatprep.mubr.msk.f32.mxu0 %vm248_vm0, %v253_v6 }
  0x52   : > { %502 = vmatpush3.bf16.msra.mxu0 %v499_v7  ;;  %v252_v9 = vld [vmem:[#allocation2 + $0x8] sm:$0xff]  ;;  %v251_v10 = vld [vmem:[#allocation2] sm:$0xff] }
  0x55   : > { %493 = vmatmul.mubr.msk.f32.vlgmr.msra.gmra.mrb[0].mxu0 %vm248_vm0, %v254_v8 }
 0x128   : > { %v494_v11 = vpop.f32.mrb[0].mxu0 }
 0x129   : > { %v342_v12 = vadd.f32 %v494_v11, %v252_v9  ;;  %v332_v13 = vpop.f32.mrb[1].mxu0 }
 0x12a   : > { %v341_v14 = vadd.f32 %v332_v13, %v251_v10 }
 0x12b   : > { %344 = vst.msk [vmem:[#allocation2 + $0x8] sm:$0xff] %vm248_vm0, %v342_v12 }
 0x12c   : > { %343 = vst.msk [vmem:[#allocation2] sm:$0xff] %vm248_vm0, %v341_v14 }
 0x132   : > { %v349_v15 = vld [vmem:[#allocation2 + $0x8] sm:$0xff] }
 0x133   : > { %351 = vst.msk [vmem:[%s242_s16 + $0x8] sm:$0xff] %vm248_vm0, %v349_v15  ;;  %v348_v16 = vld [vmem:[#allocation2] sm:$0xff] }
 0x134   : > { %350 = vst.msk [vmem:[%s242_s16] sm:$0xff] %vm248_vm0, %v348_v16 }
 0x135 PF: > { %s22_s21 = sadd.s32 1, %s660_s21   ;;  %s833_s17 = smov %s644_s18 }
 0x136   : > { %p19_p0 = scmp.ge.s32.totalorder %s22_s21, 11   ;;  %s834_s18 = smov %s648_s0 }
 0x137   : > { %s835_s0 = smov %s740_s6  ;;  %s836_s19 = smov %s656_s20 }
 0x138   : > { %s837_s20 = smov %s839_s22  ;;  %21 = sbr.rel (!%p19_p0) target bundleno = 19 (0x13), region = 79 }
 0x13f   :  { %380 = vsyncpa [#allocation6], 1 }
 0x140   :  { %382 = vsyncpa [#allocation6 + $0x1], 1 }

</bundles_post_ra>
